<compile_context>
chip_gen: v6e
topology: v6e:2x2x1
jax: 0.10.0
libtpu: 0.0.40
codegen_flags: <defaults>
</compile_context>

<pallas_src>
import jax
import jax.numpy as jnp
from jax.experimental import pallas as pl
from jax.experimental.pallas import tpu as pltpu


# ------------------------------ configuration -------------------------------

OBS_SIZE = 16      # observation_space.shape[0]
ACT_SIZE = 4       # action_space.shape[0]
K = 4              # params['k']
HIDDEN = 32        # critic_tail hidden widths
USE_ACTION = True  # params['critic_use_action']

IN_W = OBS_SIZE + K * ACT_SIZE      # 32  (packed kernel input width)
WIDE = K * HIDDEN                   # 128 (block-diag hidden width: 4 heads x 32)
W_ROWS = IN_W + 2 * WIDE            # 288 (rows of the packed weight slab)
GRAIN = 16                          # bf16 sublane packing granularity


# ------------------------------ Pallas kernel --------------------------------

def _critic_fused_kernel(x_ref, w_ref, b_ref, out_ref):
    """Fused repeat+concat+3-layer-MLP for one (TILE_B, ...) row block.

    x_ref:   (TB, 32)  bf16   rows = [obs(16) | act_k0(4) .. act_k3(4)]
    w_ref:   (288,128) bf16   [W1_bd(32,128); W2_bd(128,128); W3_bd(128,128)]
    b_ref:   (3, 128)  f32    [b1 tiled; b2 tiled; b3 broadcast]
    out_ref: (TB, K)   f32
    """
    x = x_ref[...]                                   # (TB, 32) bf16
    w1 = w_ref[0:IN_W, :]                            # (32, 128)
    w2 = w_ref[IN_W:IN_W + WIDE, :]                  # (128, 128)
    w3 = w_ref[IN_W + WIDE:W_ROWS, :]                # (128, 128), cols >= K are zero
    b1 = b_ref[0:1, :]
    b2 = b_ref[1:2, :]
    b3 = b_ref[2:3, :]

    h1 = jnp.dot(x, w1, preferred_element_type=jnp.float32) + b1      # (TB, 128) f32
    h1 = jnp.maximum(h1, 0.0).astype(jnp.bfloat16)                    # ReLU, bf16 for MXU
    h2 = jnp.dot(h1, w2, preferred_element_type=jnp.float32) + b2
    h2 = jnp.maximum(h2, 0.0).astype(jnp.bfloat16)
    y = jnp.dot(h2, w3, preferred_element_type=jnp.float32) + b3      # (TB, 128) f32
    out_ref[...] = y[:, :out_ref.shape[1]]                            # first K lanes


def _pick_tile_b(b, target=2048):
    """Row tile: big (amortize per-step overhead), 16-aligned (bf16 sublanes),
    capped at ~B/2 for large B so the 'parallel' axis keeps both v7x TCs busy."""
    if b <= GRAIN or b % GRAIN != 0:
        return b                                     # single full block (always legal)
    t = min(target, b)
    if b >= 512:
        t = min(t, (b // 2 // GRAIN) * GRAIN)        # >=2 grid steps for v7x megacore
    t = max(GRAIN, (t // GRAIN) * GRAIN)
    d = t
    while d > max(GRAIN, t // 2) and b % d != 0:     # prefer a divisor (no ragged tail)
        d -= GRAIN
    return d if b % d == 0 else t                    # ragged tail is masked by Pallas


def critic_forward_pallas(packed, obs, action):
    """Fused Critic.forward(obs, action, reshape=True) -> (B, K) via Pallas."""
    w_slab, b_slab = packed
    b = obs.shape[0]
    # One cheap XLA concat: merged lane-denser (B, 32) operand, bf16 for the MXU/DMA.
    x = jnp.concatenate([obs, action.reshape(b, K * ACT_SIZE)],
                        axis=1).astype(jnp.bfloat16)

    tile_b = _pick_tile_b(b)
    grid = (pl.cdiv(b, tile_b),)

    rows = lambda i: (i, 0)
    const = lambda i: (0, 0)                         # weight slabs stay VMEM-resident

    return pl.pallas_call(
        _critic_fused_kernel,
        out_shape=jax.ShapeDtypeStruct((b, K), jnp.float32),
        grid=grid,
        in_specs=[
            pl.BlockSpec((tile_b, IN_W), rows),
            pl.BlockSpec(w_slab.shape, const),
            pl.BlockSpec(b_slab.shape, const),
        ],
        out_specs=pl.BlockSpec((tile_b, K), rows),
        compiler_params=pltpu.CompilerParams(
            dimension_semantics=("parallel",),       # megacore sharding on v7x
            vmem_limit_bytes=32 * 1024 * 1024),
    )(x, w_slab, b_slab)


def critic_forward(params, packed, obs, action):
    """Module-equivalent forward with small-batch dispatch (launch-overhead guard)."""
    if obs.shape[0] < 256:
        # Plain XLA wins at tiny B: the whole pallas_call would be fixed overhead.
        return critic_forward_ref(params, obs, action)
    return critic_forward_pallas(packed, obs, action)


# ------------------------------ params & packing -----------------------------

def init_critic_params(key):
    """nn.Linear-style init (uniform +/- 1/sqrt(fan_in)) in natural layout."""
    in_dim = OBS_SIZE + (ACT_SIZE if USE_ACTION else 0)

    def linear(k, fan_in, fan_out):
        kw, kb = jax.random.split(k)
        bound = float(fan_in) ** -0.5
        w = jax.random.uniform(kw, (fan_in, fan_out), jnp.float32, -bound, bound)
        bb = jax.random.uniform(kb, (1, fan_out), jnp.float32, -bound, bound)
        return w, bb

    k1, k2, k3 = jax.random.split(key, 3)
    return (linear(k1, in_dim, HIDDEN),   # (20,32),(1,32)
            linear(k2, HIDDEN, HIDDEN),   # (32,32),(1,32)
            linear(k3, HIDDEN, 1))        # (32,1),(1,1)


def pack_critic_params(params):
    """Host-side block-diagonal packing into one bf16 weight slab + one f32 bias slab."""
    (w1, b1), (w2, b2), (w3, b3) = params
    w1_obs, w1_act = w1[:OBS_SIZE], w1[OBS_SIZE:]

    # Layer 1: obs part tiled across all K heads, action part block-diagonal.
    top = jnp.tile(w1_obs, (1, K))                                      # (16, 128)
    bot = jax.scipy.linalg.block_diag(*([w1_act] * K))                  # (16, 128)
    w1_bd = jnp.concatenate([top, bot], axis=0)                         # (32, 128)
    # Layer 2: block-diagonal repeat of W2.
    w2_bd = jax.scipy.linalg.block_diag(*([w2] * K))                    # (128, 128)
    # Layer 3: block-diagonal w3 columns, zero-padded to 128 output lanes.
    w3_bd = jax.scipy.linalg.block_diag(*([w3] * K))                    # (128, 4)
    w3_bd = jnp.pad(w3_bd, ((0, 0), (0, WIDE - K)))                     # (128, 128)

    w_slab = jnp.concatenate([w1_bd, w2_bd, w3_bd], axis=0).astype(jnp.bfloat16)  # (288,128)
    b_slab = jnp.stack([jnp.tile(b1[0], K),
                        jnp.tile(b2[0], K),
                        jnp.full((WIDE,), b3[0, 0], jnp.float32)], axis=0)        # (3,128)
    return w_slab, b_slab.astype(jnp.float32)


# ------------------------------ references -----------------------------------

def critic_forward_ref(params, obs, action):
    """Pure-JAX f32 reference mirroring the PyTorch forward (reshape=True path)."""
    (w1, b1), (w2, b2), (w3, b3) = params
    act = action.reshape(-1, ACT_SIZE)
    obs_r = jnp.repeat(obs[:, None, :], K, axis=1).reshape(-1, OBS_SIZE)
    x = jnp.concatenate([obs_r, act], axis=1)
    hi = jax.lax.Precision.HIGHEST
    h = jnp.maximum(jnp.dot(x, w1, precision=hi) + b1, 0.0)
    h = jnp.maximum(jnp.dot(h, w2, precision=hi) + b2, 0.0)
    out = jnp.dot(h, w3, precision=hi) + b3
    return out.reshape(-1, K)


def critic_forward_packed_ref(packed, obs, action):
    """Plain-JAX replica of the kernel math (bf16 MXU inputs, f32 accumulation)."""
    w, bias = packed
    b = obs.shape[0]
    x = jnp.concatenate([obs, action.reshape(b, K * ACT_SIZE)],
                        axis=1).astype(jnp.bfloat16)
    h1 = jnp.maximum(jnp.dot(x, w[:IN_W],
                             preferred_element_type=jnp.float32) + bias[0:1], 0.0)
    h2 = jnp.maximum(jnp.dot(h1.astype(jnp.bfloat16), w[IN_W:IN_W + WIDE],
                             preferred_element_type=jnp.float32) + bias[1:2], 0.0)
    y = jnp.dot(h2.astype(jnp.bfloat16), w[IN_W + WIDE:],
                preferred_element_type=jnp.float32) + bias[2:3]
    return y[:, :K]


# ----------------------------------- main ------------------------------------

if __name__ == "__main__":
    key = jax.random.PRNGKey(0)
    kp, ko, ka = jax.random.split(key, 3)
    params = init_critic_params(kp)
    packed = pack_critic_params(params)

    # Small shapes matching the module (batch=2, k=4 actions per obs).
    B = 2
    obs = jax.random.normal(ko, (B, OBS_SIZE), jnp.float32)          # (2, 16)
    action = jax.random.normal(ka, (B, K, ACT_SIZE), jnp.float32)    # (2, 4, 4)

    out = jax.block_until_ready(critic_forward_pallas(packed, obs, action))  # (2, 4)
    assert out.shape == (B, K), out.shape
    # Tight check vs. an identical-precision (bf16-MXU) plain-JAX replica.
    ref_bf16 = critic_forward_packed_ref(packed, obs, action)
    assert jnp.allclose(out, ref_bf16, atol=1e-3, rtol=1e-3), (out, ref_bf16)
    # Loose check vs. the f32 PyTorch-equivalent reference (bf16 MXU inputs).
    ref = critic_forward_ref(params, obs, action)
    assert jnp.allclose(out, ref, atol=7e-2, rtol=5e-2), (out, ref)

    # Larger batch exercises the pipelined row grid (tile_b=1024 -> grid=(2,)).
    B2 = 2048
    ko2, ka2 = jax.random.split(jax.random.PRNGKey(1))
    obs2 = jax.random.normal(ko2, (B2, OBS_SIZE), jnp.float32)
    action2 = jax.random.normal(ka2, (B2, K, ACT_SIZE), jnp.float32)
    out2 = jax.block_until_ready(critic_forward(params, packed, obs2, action2))
    assert out2.shape == (B2, K), out2.shape
    ref2_bf16 = critic_forward_packed_ref(packed, obs2, action2)
    assert jnp.allclose(out2, ref2_bf16, atol=1e-3, rtol=1e-3)
    ref2 = critic_forward_ref(params, obs2, action2)
    assert jnp.allclose(out2, ref2, atol=1e-1, rtol=5e-2)

    print("KERNEL_OK")
</pallas_src>

<mosaic_0001>
module attributes {stable_mosaic.version = 11 : i64} {
  func.func @_critic_fused_kernel(%arg0: i32, %arg1: memref<2x32xbf16, #tpu.memory_space<vmem>>, %arg2: memref<288x128xbf16, #tpu.memory_space<vmem>>, %arg3: memref<3x128xf32, #tpu.memory_space<vmem>>, %arg4: memref<2x4xf32, #tpu.memory_space<vmem>>) attributes {dimension_semantics = [#tpu.dimension_semantics<parallel>], iteration_bounds = array<i64: 1>, scalar_prefetch = 0 : i64, scratch_operands = 0 : i64, tpu.core_type = #tpu.core_type<tc>, window_params = [{transform_indices = @transform_0, window_bounds = array<i64: 2, 32>}, {pipeline_mode = #tpu.pipeline_mode<synchronous>, transform_indices = @transform_1, window_bounds = array<i64: 288, 128>}, {pipeline_mode = #tpu.pipeline_mode<synchronous>, transform_indices = @transform_2, window_bounds = array<i64: 3, 128>}, {transform_indices = @transform_3, window_bounds = array<i64: 2, 4>}]} {
    %c0 = arith.constant 0 : index
    %c0_0 = arith.constant 0 : index
    %0 = vector.load %arg1[%c0, %c0_0] : memref<2x32xbf16, #tpu.memory_space<vmem>>, vector<2x32xbf16>
    %c0_1 = arith.constant 0 : index
    %c0_2 = arith.constant 0 : index
    %1 = vector.load %arg2[%c0_1, %c0_2] : memref<288x128xbf16, #tpu.memory_space<vmem>>, vector<32x128xbf16>
    %c32 = arith.constant 32 : index
    %c0_3 = arith.constant 0 : index
    %2 = vector.load %arg2[%c32, %c0_3] : memref<288x128xbf16, #tpu.memory_space<vmem>>, vector<128x128xbf16>
    %c160 = arith.constant 160 : index
    %c0_4 = arith.constant 0 : index
    %3 = vector.load %arg2[%c160, %c0_4] : memref<288x128xbf16, #tpu.memory_space<vmem>>, vector<128x128xbf16>
    %c0_5 = arith.constant 0 : index
    %c0_6 = arith.constant 0 : index
    %4 = vector.load %arg3[%c0_5, %c0_6] : memref<3x128xf32, #tpu.memory_space<vmem>>, vector<1x128xf32>
    %c1 = arith.constant 1 : index
    %c0_7 = arith.constant 0 : index
    %5 = vector.load %arg3[%c1, %c0_7] : memref<3x128xf32, #tpu.memory_space<vmem>>, vector<1x128xf32>
    %c2 = arith.constant 2 : index
    %c0_8 = arith.constant 0 : index
    %6 = vector.load %arg3[%c2, %c0_8] : memref<3x128xf32, #tpu.memory_space<vmem>>, vector<1x128xf32>
    %cst = arith.constant dense<0.000000e+00> : vector<2x128xf32>
    %7 = tpu.matmul %0, %1, %cst {dimension_numbers = #tpu.dot_dimension_numbers<[1], [0], [0], [1], [0, 0, 1, 1], [], []>} : vector<2x32xbf16>, vector<32x128xbf16>, vector<2x128xf32> -> vector<2x128xf32>
    %8 = vector.broadcast %4 : vector<1x128xf32> to vector<2x128xf32>
    %9 = arith.addf %7, %8 : vector<2x128xf32>
    %cst_9 = arith.constant 0.000000e+00 : f32
    %10 = vector.broadcast %cst_9 : f32 to vector<2x128xf32>
    %11 = arith.maximumf %9, %10 : vector<2x128xf32>
    %12 = arith.truncf %11 : vector<2x128xf32> to vector<2x128xbf16>
    %cst_10 = arith.constant dense<0.000000e+00> : vector<2x128xf32>
    %13 = tpu.matmul %12, %2, %cst_10 {dimension_numbers = #tpu.dot_dimension_numbers<[1], [0], [0], [1], [0, 0, 1, 1], [], []>} : vector<2x128xbf16>, vector<128x128xbf16>, vector<2x128xf32> -> vector<2x128xf32>
    %14 = vector.broadcast %5 : vector<1x128xf32> to vector<2x128xf32>
    %15 = arith.addf %13, %14 : vector<2x128xf32>
    %cst_11 = arith.constant 0.000000e+00 : f32
    %16 = vector.broadcast %cst_11 : f32 to vector<2x128xf32>
    %17 = arith.maximumf %15, %16 : vector<2x128xf32>
    %18 = arith.truncf %17 : vector<2x128xf32> to vector<2x128xbf16>
    %cst_12 = arith.constant dense<0.000000e+00> : vector<2x128xf32>
    %19 = tpu.matmul %18, %3, %cst_12 {dimension_numbers = #tpu.dot_dimension_numbers<[1], [0], [0], [1], [0, 0, 1, 1], [], []>} : vector<2x128xbf16>, vector<128x128xbf16>, vector<2x128xf32> -> vector<2x128xf32>
    %20 = vector.broadcast %6 : vector<1x128xf32> to vector<2x128xf32>
    %21 = arith.addf %19, %20 : vector<2x128xf32>
    %22 = vector.extract_strided_slice %21 {offsets = [0, 0], sizes = [2, 4], strides = [1, 1]} : vector<2x128xf32> to vector<2x4xf32>
    %c0_13 = arith.constant 0 : index
    %c0_14 = arith.constant 0 : index
    %23 = vector.load %arg4[%c0_13, %c0_14] : memref<2x4xf32, #tpu.memory_space<vmem>>, vector<2x4xf32>
    tpu.vector_store %arg4[%c0_13, %c0_14], %22 {strides = array<i32>} : memref<2x4xf32, #tpu.memory_space<vmem>>, vector<2x4xf32>,
    return
  }
  func.func @transform_0(%arg0: i32) -> (i32, i32) {
    %c0_i32 = arith.constant 0 : i32
    %c0_i32_0 = arith.constant 0 : i32
    return %arg0, %c0_i32 : i32, i32
  }
  func.func @transform_1(%arg0: i32) -> (i32, i32) {
    %c0_i32 = arith.constant 0 : i32
    %c0_i32_0 = arith.constant 0 : i32
    %c0_i32_1 = arith.constant 0 : i32
    return %c0_i32, %c0_i32_0 : i32, i32
  }
  func.func @transform_2(%arg0: i32) -> (i32, i32) {
    %c0_i32 = arith.constant 0 : i32
    %c0_i32_0 = arith.constant 0 : i32
    %c0_i32_1 = arith.constant 0 : i32
    return %c0_i32, %c0_i32_0 : i32, i32
  }
  func.func @transform_3(%arg0: i32) -> (i32, i32) {
    %c0_i32 = arith.constant 0 : i32
    %c0_i32_0 = arith.constant 0 : i32
    return %arg0, %c0_i32 : i32, i32
  }
}

</mosaic_0001>

<bundles_post_ra>
// kernel: tpu_custom_call.1
= control target key start
LH: loop header
LB: loop body
LE: loop exit
PB: predicated region body
PF: predicated region fallthrough
CT: control target
= control target key end

     0   :  { %8 = vsyncpa [#allocation3], 0  ;;  %s626_s0 = inlined_call_operand.hbm [shape: bf16[2,32], index: 0, kind: input, shape index: {}]   ;;  %s627_s1 = inlined_call_operand.hbm [shape: bf16[288,128], index: 1, kind: input, shape index: {}]   ;;  %s628_s2 = inlined_call_operand.hbm [shape: f32[3,128], index: 2, kind: input, shape index: {}]   ;;  %s629_s3 = inlined_call_operand.hbm [shape: f32[2,4], index: 3, kind: output, shape index: {}]  }
   0x1   :  { %9 = vsyncpa [#allocation6], 0 }
   0x2   :  { %10 = vsyncpa [#allocation4], 0  ;;  %s562_s12 = smov [#allocation5]  }
   0x3   :  { %s26_s13 = sshll.u32 %s562_s12, 4  ;;  %s27_s13 = int_to_ptr.vmem [resolvable:$true] %s26_s13 }
   0x4   :  { %s484_s14 = scalar_lea.vmem %s27_s13, 2304  ;;  %p489_p1 = scmp.lt.s32.totalorder %s27_s13, %s27_s13 }
   0x5   :  { %p485_p0 = scmp.ne.s32.totalorder %s27_s13, %s484_s14  ;;  %p490_p2 = scmp.lt.s32.totalorder %s484_s14, %s484_s14 }
   0x7   :  { %p491_p3 = por %p490_p2, %p489_p1 }
   0x9   :  { %p492_p4 = pnand %p491_p3, %p485_p0 }
   0xb   :  { %495 = shalt.err (!%p492_p4)
}
   0xc   :  { %s563_s15 = smov 64   ;;  %s564_s16 = smov 4  }
   0xd   :  { %32 = dma.hbm_to_vmem [thread:$0]  %s627_s1, 2304, %s27_s13, [#allocation6], %s563_s15, %s563_s15, %s564_s16  }
   0xe   :  { %s565_s19 = smov [#allocation2]   ;;  %s566_s21 = smov [#allocation7]  }
   0xf   :  { %s17_s20 = sshll.u32 %s565_s19, 4  ;;  %s39_s22 = sshll.u32 %s566_s21, 4  ;;  %s18_s20 = int_to_ptr.vmem [resolvable:$true] %s17_s20  ;;  %s40_s22 = int_to_ptr.vmem [resolvable:$true] %s39_s22 }
  0x10   :  { %s504_s23 = scalar_lea.vmem %s18_s20, 16  ;;  %s508_s24 = scalar_lea.vmem %s18_s20, 32 }
  0x11   :  { %p505_p5 = scmp.ne.s32.totalorder %s18_s20, %s504_s23  ;;  %p509_p6 = scmp.lt.s32.totalorder %s18_s20, %s18_s20 }
  0x12   :  { %p510_p7 = scmp.lt.s32.totalorder %s508_s24, %s504_s23 }
  0x14   :  { %p511_p8 = por %p510_p7, %p509_p6 }
  0x16   :  { %p512_p9 = pnand %p511_p8, %p505_p5 }
  0x18   :  { %515 = shalt.err (!%p512_p9)
}
  0x19   :  { %20 = dma.hbm_to_vmem [thread:$0]  %s626_s0, 16, %s18_s20, [#allocation3]  }
  0x1a   :  { %s524_s27 = scalar_lea.vmem %s40_s22, 64  ;;  %p529_p11 = scmp.lt.s32.totalorder %s40_s22, %s40_s22 }
  0x1b   :  { %p525_p10 = scmp.ne.s32.totalorder %s40_s22, %s524_s27  ;;  %p530_p12 = scmp.lt.s32.totalorder %s524_s27, %s524_s27 }
  0x1d   :  { %p531_p13 = por %p530_p12, %p529_p11 }
  0x1f   :  { %p532_p0 = pnand %p531_p13, %p525_p10 }
  0x21   :  { %535 = shalt.err (!%p532_p0)
}
  0x22   :  { %42 = dma.hbm_to_vmem [thread:$0]  %s628_s2, 64, %s40_s22, [#allocation6]  }
  0x23   :  { %556 = dma.done.wait [#allocation3], 16  }
  0x24   :  { %557 = vsyncadd [#allocation3], 4294967280 }
  0x25   :  { %558 = dma.done.wait [#allocation6], 2368  }
  0x26   :  { %559 = vsyncadd [#allocation6], 4294964928  ;;  %v567_v0 = vmov 0.0   ;;  %vm568_vm0 = vmmov 0   ;;  %v458_v1 = vld [vmem:[#allocation5 + $0x8] sm:$0xff]   ;;  %v459_v2 = vld [vmem:[#allocation5] sm:$0xff]  }
  0x27   :  { %402 = vmatprep.subr.bf16.mxu0 %v567_v0  ;;  %406 = vmatprep.mubr.msk.bf16.mxu0 %vm568_vm0, %v567_v0  ;;  %v460_v3 = vld [vmem:[#allocation5 + $0x48] sm:$0xff]   ;;  %vm109_vm1 = vcmask 261120   ;;  %v461_v4 = vld [vmem:[#allocation5 + $0x40] sm:$0xff]   ;;  %v53_v5 = vld [vmem:[#allocation2] sm:$0x1]  ;;  %s569_s0 = smov [#allocation8]  }
  0x28   :  { %410 = vmatprep.subr.bf16.mxu1 %v567_v0  ;;  %426 = vmatprep.mubr.msk.bf16.mxu1 %vm568_vm0, %v567_v0  ;;  %v462_v6 = vld [vmem:[#allocation5 + $0x38] sm:$0xff]   ;;  %v463_v7 = vld [vmem:[#allocation5 + $0x30] sm:$0xff]   ;;  %v464_v8 = vld [vmem:[#allocation5 + $0x28] sm:$0xff]   ;;  %s349_s2 = sshll.u32 %s569_s0, 4  ;;  %vm341_vm2 = vcmask 25600   ;;  %s350_s2 = int_to_ptr.vmem [resolvable:$true] %s349_s2 }
  0x29   :  { %403 = vmatpush3.bf16.msra.mxu0 %v458_v1  ;;  %411 = vmatpush3.bf16.msra.mxu1 %v460_v3  ;;  %v465_v9 = vld [vmem:[#allocation5 + $0x20] sm:$0xff]   ;;  %v466_v10 = vld [vmem:[#allocation5 + $0x18] sm:$0xff]   ;;  %v467_v11 = vld [vmem:[#allocation5 + $0x10] sm:$0xff]   ;;  %s536_s29 = scalar_lea.vmem %s350_s2, 32  ;;  %p541_p2 = scmp.lt.s32.totalorder %s350_s2, %s350_s2 }
  0x2a   :  { %404 = vmatprep.subr.bf16.mxu0 %v567_v0  ;;  %412 = vmatprep.subr.bf16.mxu1 %v567_v0  ;;  %v468_v12 = vld [vmem:[#allocation5 + $0x88] sm:$0xff]   ;;  %v469_v13 = vld [vmem:[#allocation5 + $0x80] sm:$0xff]   ;;  %v470_v14 = vld [vmem:[#allocation5 + $0x78] sm:$0xff]   ;;  %p537_p1 = scmp.ne.s32.totalorder %s350_s2, %s536_s29  ;;  %p542_p3 = scmp.lt.s32.totalorder %s536_s29, %s536_s29 }
  0x2b   :  { %v471_v15 = vld [vmem:[#allocation5 + $0x70] sm:$0xff]   ;;  %v472_v16 = vld [vmem:[#allocation5 + $0x68] sm:$0xff]   ;;  %v473_v17 = vld [vmem:[#allocation5 + $0x60] sm:$0xff]  }
  0x2c   :  { %v359_v18 = vld [vmem:[#allocation7] ss:$0 sm:$0xff]  ;;  %v474_v26 = vld [vmem:[#allocation5 + $0x58] sm:$0xff]   ;;  %v363_v28 = vld [vmem:[#allocation7 + $0x1] ss:$0 sm:$0xff]  ;;  %p543_p4 = por %p542_p3, %p541_p2 }
  0x2d   :  { %405 = vmatpush3.bf16.msra.mxu0 %v459_v2  ;;  %413 = vmatpush3.bf16.msra.mxu1 %v461_v4  ;;  %v475_v27 = vld [vmem:[#allocation5 + $0x50] sm:$0xff]  }
  0x2e   :  { %430 = vmatprep.subr.bf16.mxu0 %v567_v0  ;;  %414 = vmatprep.subr.bf16.mxu1 %v567_v0  ;;  %v372_v36 = vld [vmem:[#allocation7 + $0x2] ss:$0 sm:$0xff]  ;;  %p544_p5 = pnand %p543_p4, %p537_p1 }
  0x30   :  { %407 = vmatmul.mubr.msk.bf16.vlgmr.msra.gmra.mxu0 %vm109_vm1, %v53_v5 }
  0x31   :  { %446 = vmatprep.mubr.msk.bf16.mxu0 %vm568_vm0, %v567_v0  ;;  %415 = vmatpush3.bf16.msra.mxu1 %v462_v6 }
  0x32   :  { %416 = vmatprep.subr.bf16.mxu1 %v567_v0  ;;  %431 = vmatpush3.bf16.msra.mxu0 %v468_v12 }
  0x33   :  { %432 = vmatprep.subr.bf16.mxu0 %v567_v0 }
  0x35   :  { %417 = vmatpush3.bf16.msra.mxu1 %v463_v7 }
  0x36   :  { %418 = vmatprep.subr.bf16.mxu1 %v567_v0  ;;  %433 = vmatpush3.bf16.msra.mxu0 %v469_v13 }
  0x37   :  { %434 = vmatprep.subr.bf16.mxu0 %v567_v0 }
  0x39   :  { %419 = vmatpush3.bf16.msra.mxu1 %v464_v8 }
  0x3a   :  { %420 = vmatprep.subr.bf16.mxu1 %v567_v0  ;;  %435 = vmatpush3.bf16.msra.mxu0 %v470_v14 }
  0x3b   :  { %436 = vmatprep.subr.bf16.mxu0 %v567_v0 }
  0x3d   :  { %421 = vmatpush3.bf16.msra.mxu1 %v465_v9 }
  0x3e   :  { %422 = vmatprep.subr.bf16.mxu1 %v567_v0  ;;  %437 = vmatpush3.bf16.msra.mxu0 %v471_v15 }
  0x3f   :  { %438 = vmatprep.subr.bf16.mxu0 %v567_v0 }
  0x41   :  { %423 = vmatpush3.bf16.msra.mxu1 %v466_v10 }
  0x42   :  { %424 = vmatprep.subr.bf16.mxu1 %v567_v0  ;;  %439 = vmatpush3.bf16.msra.mxu0 %v472_v16 }
  0x43   :  { %440 = vmatprep.subr.bf16.mxu0 %v567_v0 }
  0x45   :  { %425 = vmatpush3.bf16.msra.mxu1 %v467_v11 }
  0x46   :  { %441 = vmatpush3.bf16.msra.mxu0 %v473_v17 }
  0x47   :  { %442 = vmatprep.subr.bf16.mxu0 %v567_v0 }
  0x4a   :  { %443 = vmatpush3.bf16.msra.mxu0 %v474_v26 }
  0x4b   :  { %444 = vmatprep.subr.bf16.mxu0 %v567_v0 }
  0x4e   :  { %445 = vmatpush3.bf16.msra.mxu0 %v475_v27 }
  0xf0   :  { %v147_v19 = vpop.f32.mrf.mxu0 }
  0xf1   :  { %v148_v20 = vadd.f32 %v359_v18, %v147_v19 }
  0xf2   :  { %v408_v21 = vpop.f32.mrf.mxu0 }
  0xf3   :  { %v153_v22 = vmax.f32 %v148_v20, 0.0 }
  0xf4   :  { %v150_v23 = vpop.f32.mrf.mxu0 }
  0xf5   :  { %v154_v24 = vpack.c.bf16 %v153_v22, %v153_v22 }
  0xf6   :  { %v409_v25 = vpop.f32.mrf.mxu0 }
  0xf7   :  { %427 = vmatmul.mubr.bf16.vlgmr.msra.gmra.mxu1 %v154_v24 }
 0x1b7   :  { %v241_v29 = vpop.f32.mrf.mxu1 }
 0x1b8   :  { %v242_v30 = vadd.f32 %v363_v28, %v241_v29 }
 0x1b9   :  { %v428_v31 = vpop.f32.mrf.mxu1 }
 0x1ba   :  { %v247_v32 = vmax.f32 %v242_v30, 0.0 }
 0x1bb   :  { %v244_v33 = vpop.f32.mrf.mxu1 }
 0x1bc   :  { %v248_v34 = vpack.c.bf16 %v247_v32, %v247_v32 }
 0x1bd   :  { %v429_v35 = vpop.f32.mrf.mxu1 }
 0x1be   :  { %447 = vmatmul.mubr.bf16.vlgmr.msra.gmra.mxu0 %v248_v34 }
 0x27e   :  { %v335_v37 = vpop.f32.mrf.mxu0 }
 0x27f   :  { %v336_v38 = vadd.f32 %v372_v36, %v335_v37 }
 0x280   :  { %v448_v39 = vpop.f32.mrf.mxu0 }
 0x281   :  { %342 = vst.msk [vmem:[#allocation8] sm:$0x3] %vm341_vm2, %v336_v38 }
 0x282   :  { %v338_v40 = vpop.f32.mrf.mxu0 }
 0x283   :  { %547 = shalt.err (!%p544_p5)
}
 0x284   :  { %352 = dma.vmem_to_hbm [thread:$0]  %s350_s2, 32, %s629_s3, [#allocation4]   ;;  %v449_v41 = vpop.f32.mrf.mxu0 }
 0x285   :  { %560 = dma.done.wait [#allocation4], 32  }
 0x286   :  { %561 = vsyncadd [#allocation4], 4294967264 }
 0x287   :  { %356 = vsyncpa [#allocation3], 1 }
 0x288   :  { %357 = vsyncpa [#allocation6], 1 }
 0x289   :  { %358 = vsyncpa [#allocation4], 1 }

</bundles_post_ra>
